<compile_context>
chip_gen: v5e
topology: v5e:2x2
jax: 0.10.0
libtpu: 0.0.40
codegen_flags: <defaults>
</compile_context>

<pallas_src>
import math

import jax
import jax.numpy as jnp
from jax.experimental import pallas as pl
from jax.experimental.pallas import tpu as pltpu


# ---------------------------------------------------------------------------
# Kernels
# ---------------------------------------------------------------------------

def _single_block_kernel(x_ref, w_ref, b_ref, o_ref):
    """relu(x @ w + b) in one shot: whole problem resident in VMEM."""
    acc = jnp.dot(x_ref[...], w_ref[...], preferred_element_type=jnp.float32)
    o_ref[...] = jnp.maximum(acc + b_ref[...], 0.0).astype(o_ref.dtype)


def _tiled_kernel(x_ref, w_ref, b_ref, o_ref):
    """M/N-parallel, K-reduction tiled path.

    Accumulates directly into the VMEM-resident f32 output block (its index_map
    is constant along the innermost K axis), with bias + ReLU fused into the
    final K step. No separate accumulator scratch.
    """
    k = pl.program_id(2)

    @pl.when(k == 0)
    def _init():
        o_ref[...] = jnp.zeros_like(o_ref)

    o_ref[...] += jnp.dot(
        x_ref[...], w_ref[...], preferred_element_type=jnp.float32
    )

    @pl.when(k == pl.num_programs(2) - 1)
    def _finalize():
        o_ref[...] = jnp.maximum(o_ref[...] + b_ref[...], 0.0)


# ---------------------------------------------------------------------------
# Wrapper / tiling heuristics
# ---------------------------------------------------------------------------

def _round_up(x, m):
    return (x + m - 1) // m * m


def _pick_tile(total, multiple, cap):
    """Largest t <= cap with t % multiple == 0 and total % t == 0.

    Assumes total % multiple == 0. Falls back to `multiple`.
    """
    cap = max(multiple, min(cap, total))
    best = multiple
    t = multiple
    while t <= cap:
        if total % t == 0:
            best = t
        t += multiple
    return best


def _vmem_budget_bytes():
    """Generation-aware scoped-VMEM target, leaving headroom for compiler scratch.

    ~16 MiB on v7x (64 MiB physical per TC), ~32 MiB on v5e/v6e (128 MiB physical).
    """
    cap = 128 << 20
    try:
        cap = int(pltpu.get_tpu_info().vmem_capacity_bytes)
    except Exception:
        pass
    return int(min(max(cap // 4, 16 << 20), 32 << 20))


def flatten_linear(
    x,
    w,
    b,
    *,
    compute_dtype=jnp.bfloat16,
    single_block_bytes_max=8 << 20,
    max_tk=2048,
):
    """relu(flatten(x) @ w + b) with matmul / bias / ReLU fused in a Pallas kernel.

    x: (B, C, H, W) float32  (NCHW, same as PyTorch)
    w: (D, N) float32 with D = C*H*W
    b: (N,)   float32
    """
    B = x.shape[0]
    D = math.prod(x.shape[1:])          # trace-time Python int (no device op)
    N = w.shape[1]
    assert w.shape == (D, N) and b.shape == (N,)

    budget = _vmem_budget_bytes()
    itemsize = jnp.dtype(compute_dtype).itemsize

    # Flatten in NCHW row-major order (matches torch.flatten). Glue stays in JAX.
    # TODO(synk): pre-cast/pad the static weight once at parameter init in a real
    # model instead of per call (here the pad is skipped when shapes already fit).
    x2d = x.reshape(B, D).astype(compute_dtype)
    w_c = w.astype(compute_dtype)
    b2d = b.astype(jnp.float32).reshape(1, N)

    # ---- Single-block fast path: only for problems that are truly tiny --------
    single_block_bytes = itemsize * (B * D + D * N) + 4 * (N + B * N)
    if single_block_bytes <= min(single_block_bytes_max, budget // 2):
        vmem_full = pl.BlockSpec(memory_space=pltpu.MemorySpace.VMEM)
        out = pl.pallas_call(
            _single_block_kernel,
            out_shape=jax.ShapeDtypeStruct((B, N), jnp.float32),
            in_specs=[vmem_full, vmem_full, vmem_full],
            out_specs=vmem_full,
            compiler_params=pltpu.CompilerParams(vmem_limit_bytes=budget),
            cost_estimate=pl.CostEstimate(
                flops=2 * B * D * N + 2 * B * N,
                bytes_accessed=single_block_bytes,
                transcendentals=0,
            ),
        )(x2d, w_c, b2d)
        return out.astype(x.dtype)

    # ---- Pipelined M/N/K-tiled streaming path ---------------------------------
    # M (batch) tile: 'parallel' axis; full extent when B is small / not 8-aligned.
    tm = B if (B % 8 != 0 or B <= 256) else _pick_tile(B, 8, 256)

    # N tile / padding: do NOT pad small N up to 128 (full-extent lane block is
    # legal); only pad when N is large and not 128-aligned.
    if N % 128 == 0:
        NP = N
        tn = _pick_tile(NP, 128, 512)
    elif N < 1024:
        NP, tn = N, N
    else:
        NP = _round_up(N, 128)
        tn = _pick_tile(NP, 128, 512)

    # K tile: avoid padding D unless it is not 128-aligned; size tk so the
    # double-buffered x/w tiles + resident f32 output block fit the VMEM budget.
    Dp = D if D % 128 == 0 else _round_up(D, 128)
    resident = 2 * tm * tn * 4 + 2 * tn * 4 + (1 << 20)   # out blocks + bias + slack
    per_k = 2 * (tm + tn) * itemsize                       # double-buffered x & w per unit tk
    tk_cap = min(max_tk, max(128, (budget - resident) // per_k))
    tk = _pick_tile(Dp, 128, tk_cap)

    if Dp != D or NP != N:
        x2d = jnp.pad(x2d, ((0, 0), (0, Dp - D))) if Dp != D else x2d
        w_c = jnp.pad(w_c, ((0, Dp - D), (0, NP - N)))
        b2d = jnp.pad(b2d, ((0, 0), (0, NP - N))) if NP != N else b2d

    grid = (B // tm, NP // tn, Dp // tk)

    out_p = pl.pallas_call(
        _tiled_kernel,
        out_shape=jax.ShapeDtypeStruct((B, NP), jnp.float32),
        grid_spec=pltpu.PrefetchScalarGridSpec(
            num_scalar_prefetch=0,
            grid=grid,
            in_specs=[
                pl.BlockSpec((tm, tk), lambda m, n, k: (m, k)),   # activation tile
                pl.BlockSpec((tk, tn), lambda m, n, k: (k, n)),   # streamed weight tile
                pl.BlockSpec((1, tn), lambda m, n, k: (0, n)),    # bias tile (tiny)
            ],
            out_specs=pl.BlockSpec((tm, tn), lambda m, n, k: (m, n)),
        ),
        compiler_params=pltpu.CompilerParams(
            dimension_semantics=("parallel", "parallel", "arbitrary"),
            vmem_limit_bytes=budget,
        ),
        cost_estimate=pl.CostEstimate(
            flops=2 * B * Dp * NP + 2 * B * NP,
            bytes_accessed=itemsize * (B * Dp + Dp * NP) + 4 * (NP + B * NP),
            transcendentals=0,
        ),
    )(x2d, w_c, b2d)

    out = out_p[:, :N] if NP != N else out_p
    return out.astype(x.dtype)


def reference(x, w, b):
    x2d = x.reshape(x.shape[0], -1)
    return jnp.maximum(x2d @ w + b, 0.0)


# ---------------------------------------------------------------------------
# Demo / self-check
# ---------------------------------------------------------------------------

if __name__ == "__main__":
    # Small shapes consistent with the module's forward: NCHW conv-style input.
    B, C, H, W = 2, 4, 16, 16
    out_channels = 32
    D = C * H * W  # 1024

    key = jax.random.PRNGKey(0)
    kx, kw, kb = jax.random.split(key, 3)

    x = jax.random.normal(kx, (B, C, H, W), dtype=jnp.float32)

    # Deterministic init mimicking torch.nn.Linear (uniform in +/- 1/sqrt(D)).
    bound = 1.0 / math.sqrt(D)
    w = jax.random.uniform(kw, (D, out_channels), jnp.float32, -bound, bound)
    b = jax.random.uniform(kb, (out_channels,), jnp.float32, -bound, bound)

    ref = reference(x, w, b)

    # 1) Default path: bf16 compute, single-block (whole problem ~70 KiB in VMEM).
    out = jax.block_until_ready(flatten_linear(x, w, b))
    assert out.shape == (B, out_channels)
    assert jnp.allclose(out, ref, atol=2e-2, rtol=2e-2), "bf16 single-block mismatch"

    # 2) bf16, forced tiled streaming path (4 K-steps at tk=256).
    out_t = jax.block_until_ready(
        flatten_linear(x, w, b, single_block_bytes_max=0, max_tk=256)
    )
    assert jnp.allclose(out_t, ref, atol=2e-2, rtol=2e-2), "bf16 tiled mismatch"

    # 3) f32 compute, single-block: tight tolerance.
    out_f = jax.block_until_ready(
        flatten_linear(x, w, b, compute_dtype=jnp.float32)
    )
    assert jnp.allclose(out_f, ref, atol=1e-5, rtol=1e-5), "f32 single-block mismatch"

    # 4) f32 compute, forced tiled streaming path.
    out_ft = jax.block_until_ready(
        flatten_linear(x, w, b, compute_dtype=jnp.float32,
                       single_block_bytes_max=0, max_tk=256)
    )
    assert jnp.allclose(out_ft, ref, atol=1e-5, rtol=1e-5), "f32 tiled mismatch"

    print("KERNEL_OK")
</pallas_src>

<mosaic_0001>
module attributes {stable_mosaic.version = 11 : i64} {
  func.func @_single_block_kernel(%arg0: memref<2x1024xbf16, #tpu.memory_space<vmem>>, %arg1: memref<1024x32xbf16, #tpu.memory_space<vmem>>, %arg2: memref<1x32xf32, #tpu.memory_space<vmem>>, %arg3: memref<2x32xf32, #tpu.memory_space<vmem>>) attributes {dimension_semantics = [], scalar_prefetch = 0 : i64, scratch_operands = 0 : i64, tpu.core_type = #tpu.core_type<tc>} {
    %c0 = arith.constant 0 : index
    %c0_0 = arith.constant 0 : index
    %0 = vector.load %arg0[%c0, %c0_0] : memref<2x1024xbf16, #tpu.memory_space<vmem>>, vector<2x1024xbf16>
    %c0_1 = arith.constant 0 : index
    %c0_2 = arith.constant 0 : index
    %1 = vector.load %arg1[%c0_1, %c0_2] : memref<1024x32xbf16, #tpu.memory_space<vmem>>, vector<1024x32xbf16>
    %cst = arith.constant dense<0.000000e+00> : vector<2x32xf32>
    %2 = tpu.matmul %0, %1, %cst {dimension_numbers = #tpu.dot_dimension_numbers<[1], [0], [0], [1], [0, 0, 1, 1], [], []>} : vector<2x1024xbf16>, vector<1024x32xbf16>, vector<2x32xf32> -> vector<2x32xf32>
    %c0_3 = arith.constant 0 : index
    %c0_4 = arith.constant 0 : index
    %3 = vector.load %arg2[%c0_3, %c0_4] : memref<1x32xf32, #tpu.memory_space<vmem>>, vector<1x32xf32>
    %4 = vector.broadcast %3 : vector<1x32xf32> to vector<2x32xf32>
    %5 = arith.addf %2, %4 : vector<2x32xf32>
    %cst_5 = arith.constant 0.000000e+00 : f32
    %6 = vector.broadcast %cst_5 : f32 to vector<2x32xf32>
    %7 = arith.maximumf %5, %6 : vector<2x32xf32>
    %c0_6 = arith.constant 0 : index
    %c0_7 = arith.constant 0 : index
    %8 = vector.load %arg3[%c0_6, %c0_7] : memref<2x32xf32, #tpu.memory_space<vmem>>, vector<2x32xf32>
    tpu.vector_store %arg3[%c0_6, %c0_7], %7 {strides = array<i32>} : memref<2x32xf32, #tpu.memory_space<vmem>>, vector<2x32xf32>,
    return
  }
}

</mosaic_0001>

<bundles_post_ra>
// kernel: tpu_custom_call.1
= control target key start
LH: loop header
LB: loop body
LE: loop exit
PB: predicated region body
PF: predicated region fallthrough
CT: control target
= control target key end

     0   :  { %s1243_s0 = inlined_call_operand.vmem [shape: bf16[2,1024], index: 0, kind: input, shape index: {}]   ;;  %s1244_s1 = inlined_call_operand.vmem [shape: bf16[1024,32], index: 1, kind: input, shape index: {}]   ;;  %s1245_s2 = inlined_call_operand.vmem [shape: f32[1,32], index: 2, kind: input, shape index: {}]   ;;  %s1246_s3 = inlined_call_operand.hbm [shape: f32[2,32], index: 3, kind: output, shape index: {}]  }
   0x1   :  { %v936_v0 = vld [vmem:[%s1244_s1 + $0x38] sm:$0xff]  ;;  %v935_v4 = vld [vmem:[%s1244_s1 + $0x30] sm:$0xff]  ;;  %v934_v8 = vld [vmem:[%s1244_s1 + $0x28] sm:$0xff] }
   0x2   :  { %v944_v1 = vld [vmem:[%s1244_s1 + $0x78] sm:$0xff]  ;;  %550 = vmatpush.bf16.msra.mxu0 %v936_v0  ;;  %v943_v5 = vld [vmem:[%s1244_s1 + $0x70] sm:$0xff]  ;;  %v942_v9 = vld [vmem:[%s1244_s1 + $0x68] sm:$0xff] }
   0x3   :  { %v952_v2 = vld [vmem:[%s1244_s1 + $0xb8] sm:$0xff]  ;;  %563 = vmatpush.bf16.msra.mxu1 %v944_v1  ;;  %v951_v6 = vld [vmem:[%s1244_s1 + $0xb0] sm:$0xff]  ;;  %v950_v10 = vld [vmem:[%s1244_s1 + $0xa8] sm:$0xff] }
   0x4   :  { %v960_v3 = vld [vmem:[%s1244_s1 + $0xf8] sm:$0xff]  ;;  %576 = vmatpush.bf16.msra.mxu2 %v952_v2  ;;  %v959_v7 = vld [vmem:[%s1244_s1 + $0xf0] sm:$0xff]  ;;  %v958_v11 = vld [vmem:[%s1244_s1 + $0xe8] sm:$0xff] }
   0x5   :  { %589 = vmatpush.bf16.msra.mxu3 %v960_v3  ;;  %v933_v12 = vld [vmem:[%s1244_s1 + $0x20] sm:$0xff]  ;;  %v932_v17 = vld [vmem:[%s1244_s1 + $0x18] sm:$0xff]  ;;  %v931_v21 = vld [vmem:[%s1244_s1 + $0x10] sm:$0xff] }
   0x6   :  { %551 = vmatpush.bf16.msra.mxu0 %v935_v4  ;;  %v941_v13 = vld [vmem:[%s1244_s1 + $0x60] sm:$0xff]  ;;  %v940_v18 = vld [vmem:[%s1244_s1 + $0x58] sm:$0xff]  ;;  %v939_v22 = vld [vmem:[%s1244_s1 + $0x50] sm:$0xff] }
   0x7   :  { %564 = vmatpush.bf16.msra.mxu1 %v943_v5  ;;  %v949_v14 = vld [vmem:[%s1244_s1 + $0xa0] sm:$0xff]  ;;  %v948_v19 = vld [vmem:[%s1244_s1 + $0x98] sm:$0xff] }
   0x8   :  { %577 = vmatpush.bf16.msra.mxu2 %v951_v6  ;;  %v957_v15 = vld [vmem:[%s1244_s1 + $0xe0] sm:$0xff]  ;;  %v956_v20 = vld [vmem:[%s1244_s1 + $0xd8] sm:$0xff] }
   0x9   :  { %590 = vmatpush.bf16.msra.mxu3 %v959_v7  ;;  %v15_v16 = vld [vmem:[%s1243_s0] sm:$0xff] }
   0xa   :  { %552 = vmatpush.bf16.msra.mxu0 %v934_v8  ;;  %149 = vst [vmem:[#allocation1] ss:$9 sm:$0xff] %v15_v16 }
   0xb   :  { %565 = vmatpush.bf16.msra.mxu1 %v942_v9 }
   0xc   :  { %578 = vmatpush.bf16.msra.mxu2 %v950_v10 }
   0xd   :  { %591 = vmatpush.bf16.msra.mxu3 %v958_v11 }
   0xe   :  { %553 = vmatpush.bf16.msra.mxu0 %v933_v12 }
   0xf   :  { %566 = vmatpush.bf16.msra.mxu1 %v941_v13 }
  0x10   :  { %579 = vmatpush.bf16.msra.mxu2 %v949_v14 }
  0x11   :  { %592 = vmatpush.bf16.msra.mxu3 %v957_v15 }
  0x12   :  { %554 = vmatpush.bf16.msra.mxu0 %v932_v17 }
  0x13   :  { %567 = vmatpush.bf16.msra.mxu1 %v940_v18 }
  0x14   :  { %8 = vsyncpa [#allocation3], 0  ;;  %580 = vmatpush.bf16.msra.mxu2 %v948_v19  ;;  %v947_v23 = vld [vmem:[%s1244_s1 + $0x90] sm:$0xff]  ;;  %v930_v25 = vld [vmem:[%s1244_s1 + $0x8] sm:$0xff]  ;;  %s1021_s4 = smov [#allocation2]   ;;  %vm655_vm0 = vcmask 254976  }
  0x15   :  { %593 = vmatpush.bf16.msra.mxu3 %v956_v20  ;;  %v955_v24 = vld [vmem:[%s1244_s1 + $0xd0] sm:$0xff]  ;;  %v938_v26 = vld [vmem:[%s1244_s1 + $0x48] sm:$0xff]  ;;  %v929_v29 = vld [vmem:[%s1244_s1] sm:$0xff]  ;;  %s662_s5 = sshll.u32 %s1021_s4, 4  ;;  %s663_s5 = int_to_ptr.vmem [resolvable:$true] %s662_s5 }
  0x16   :  { %555 = vmatpush.bf16.msra.mxu0 %v931_v21  ;;  %v946_v27 = vld [vmem:[%s1244_s1 + $0x88] sm:$0xff]  ;;  %v937_v30 = vld [vmem:[%s1244_s1 + $0x40] sm:$0xff]  ;;  %v968_v33 = vld [vmem:[%s1244_s1 + $0x138] sm:$0xff] }
  0x17   :  { %568 = vmatpush.bf16.msra.mxu1 %v939_v22  ;;  %v954_v28 = vld [vmem:[%s1244_s1 + $0xc8] sm:$0xff]  ;;  %v945_v31 = vld [vmem:[%s1244_s1 + $0x80] sm:$0xff]  ;;  %v976_v34 = vld [vmem:[%s1244_s1 + $0x178] sm:$0xff] }
  0x18   :  { %581 = vmatpush.bf16.msra.mxu2 %v947_v23  ;;  %v953_v32 = vld [vmem:[%s1244_s1 + $0xc0] sm:$0xff]  ;;  %v984_v35 = vld [vmem:[%s1244_s1 + $0x1b8] sm:$0xff]  ;;  %v967_v37 = vld [vmem:[%s1244_s1 + $0x130] sm:$0xff] }
  0x19   :  { %594 = vmatpush.bf16.msra.mxu3 %v955_v24  ;;  %v992_v36 = vld [vmem:[%s1244_s1 + $0x1f8] sm:$0xff]  ;;  %v975_v40 = vld [vmem:[%s1244_s1 + $0x170] sm:$0xff]  ;;  %v150_v41 = vld [vmem:[#allocation1] sm:$0xff] }
  0x1a   :  { %556 = vmatpush.bf16.msra.mxu0 %v930_v25  ;;  %v152_v38 = vld [vmem:[#allocation1 + $0x12] sm:$0xff]  ;;  %v153_v39 = vld [vmem:[#allocation1 + $0x1b] sm:$0xff]  ;;  %v151_v42 = vld [vmem:[#allocation1 + $0x9] sm:$0xff] }
  0x1b   :  { %569 = vmatpush.bf16.msra.mxu1 %v938_v26  ;;  %v983_v43 = vld [vmem:[%s1244_s1 + $0x1b0] sm:$0xff]  ;;  %v966_v45 = vld [vmem:[%s1244_s1 + $0x128] sm:$0xff]  ;;  %v965_v49 = vld [vmem:[%s1244_s1 + $0x120] sm:$0xff] }
  0x1c   :  { %582 = vmatpush.bf16.msra.mxu2 %v946_v27  ;;  %v991_v44 = vld [vmem:[%s1244_s1 + $0x1f0] sm:$0xff]  ;;  %v974_v46 = vld [vmem:[%s1244_s1 + $0x168] sm:$0xff]  ;;  %v973_v50 = vld [vmem:[%s1244_s1 + $0x160] sm:$0xff] }
  0x1d   :  { %595 = vmatpush.bf16.msra.mxu3 %v954_v28  ;;  %v982_v47 = vld [vmem:[%s1244_s1 + $0x1a8] sm:$0xff]  ;;  %v981_v51 = vld [vmem:[%s1244_s1 + $0x1a0] sm:$0xff]  ;;  %v964_v53 = vld [vmem:[%s1244_s1 + $0x118] sm:$0xff] }
  0x1e   :  { %557 = vmatpush.bf16.msra.mxu0 %v929_v29  ;;  %v990_v48 = vld [vmem:[%s1244_s1 + $0x1e8] sm:$0xff]  ;;  %v989_v52 = vld [vmem:[%s1244_s1 + $0x1e0] sm:$0xff]  ;;  %v972_v54 = vld [vmem:[%s1244_s1 + $0x158] sm:$0xff] }
  0x1f   :  { %570 = vmatpush.bf16.msra.mxu1 %v937_v30  ;;  %v980_v55 = vld [vmem:[%s1244_s1 + $0x198] sm:$0xff]  ;;  %v963_v57 = vld [vmem:[%s1244_s1 + $0x110] sm:$0xff]  ;;  %v962_v61 = vld [vmem:[%s1244_s1 + $0x108] sm:$0xff] }
  0x20   :  { %583 = vmatpush.bf16.msra.mxu2 %v945_v31  ;;  %v988_v56 = vld [vmem:[%s1244_s1 + $0x1d8] sm:$0xff]  ;;  %v971_v58 = vld [vmem:[%s1244_s1 + $0x150] sm:$0xff]  ;;  %v970_v62 = vld [vmem:[%s1244_s1 + $0x148] sm:$0xff] }
  0x21   :  { %596 = vmatpush.bf16.msra.mxu3 %v953_v32  ;;  %558 = vmatmul.bf16.vlgmr.msra.gmra.mxu0 %v150_v41  ;;  %v979_v59 = vld [vmem:[%s1244_s1 + $0x190] sm:$0xff]  ;;  %v978_v63 = vld [vmem:[%s1244_s1 + $0x188] sm:$0xff]  ;;  %v961_v1 = vld [vmem:[%s1244_s1 + $0x100] sm:$0xff] }
  0x22   :  { %602 = vmatpush.bf16.msrb.mxu0 %v968_v33  ;;  %571 = vmatmul.bf16.vlgmr.msra.gmra.mxu1 %v151_v42  ;;  %v987_v60 = vld [vmem:[%s1244_s1 + $0x1d0] sm:$0xff]  ;;  %v986_v0 = vld [vmem:[%s1244_s1 + $0x1c8] sm:$0xff]  ;;  %v969_v2 = vld [vmem:[%s1244_s1 + $0x140] sm:$0xff] }
  0x23   :  { %615 = vmatpush.bf16.msrb.mxu1 %v976_v34  ;;  %584 = vmatmul.bf16.vlgmr.msra.gmra.mxu2 %v152_v38  ;;  %v977_v3 = vld [vmem:[%s1244_s1 + $0x180] sm:$0xff]  ;;  %v155_v6 = vld [vmem:[#allocation1 + $0x2d] sm:$0xff]  ;;  %v156_v7 = vld [vmem:[#allocation1 + $0x36] sm:$0xff] }
  0x24   :  { %628 = vmatpush.bf16.msrb.mxu2 %v984_v35  ;;  %597 = vmatmul.bf16.vlgmr.msra.gmra.mxu3 %v153_v39  ;;  %v985_v4 = vld [vmem:[%s1244_s1 + $0x1c0] sm:$0xff] }
  0x25   :  { %641 = vmatpush.bf16.msrb.mxu3 %v992_v36  ;;  %v154_v5 = vld [vmem:[#allocation1 + $0x24] sm:$0xff]  ;;  %v994_v15 = vld [vmem:[%s1245_s2] ss:$0 sm:$0xff]  ;;  %s664_s2 = sshll.u32 %s1246_s3, 4  ;;  %s665_s2 = int_to_ptr.hbm [resolvable:$true] %s664_s2 }
  0x26   :  { %603 = vmatpush.bf16.msrb.mxu0 %v967_v37  ;;  %v157_v8 = vld [vmem:[#allocation1 + $0x3f] sm:$0xff] }
  0x27   :  { %616 = vmatpush.bf16.msrb.mxu1 %v975_v40 }
  0x28   :  { %629 = vmatpush.bf16.msrb.mxu2 %v983_v43 }
  0x29   :  { %642 = vmatpush.bf16.msrb.mxu3 %v991_v44 }
  0x2a   :  { %604 = vmatpush.bf16.msrb.mxu0 %v966_v45 }
  0x2b   :  { %617 = vmatpush.bf16.msrb.mxu1 %v974_v46 }
  0x2c   :  { %630 = vmatpush.bf16.msrb.mxu2 %v982_v47 }
  0x2d   :  { %643 = vmatpush.bf16.msrb.mxu3 %v990_v48 }
  0x2e   :  { %605 = vmatpush.bf16.msrb.mxu0 %v965_v49 }
  0x2f   :  { %618 = vmatpush.bf16.msrb.mxu1 %v973_v50 }
  0x30   :  { %631 = vmatpush.bf16.msrb.mxu2 %v981_v51 }
  0x31   :  { %644 = vmatpush.bf16.msrb.mxu3 %v989_v52 }
  0x32   :  { %606 = vmatpush.bf16.msrb.mxu0 %v964_v53 }
  0x33   :  { %619 = vmatpush.bf16.msrb.mxu1 %v972_v54 }
  0x34   :  { %632 = vmatpush.bf16.msrb.mxu2 %v980_v55 }
  0x35   :  { %645 = vmatpush.bf16.msrb.mxu3 %v988_v56 }
  0x36   :  { %607 = vmatpush.bf16.msrb.mxu0 %v963_v57 }
  0x37   :  { %620 = vmatpush.bf16.msrb.mxu1 %v971_v58 }
  0x38   :  { %633 = vmatpush.bf16.msrb.mxu2 %v979_v59 }
  0x39   :  { %646 = vmatpush.bf16.msrb.mxu3 %v987_v60 }
  0x3a   :  { %608 = vmatpush.bf16.msrb.mxu0 %v962_v61 }
  0x3b   :  { %621 = vmatpush.bf16.msrb.mxu1 %v970_v62 }
  0x3c   :  { %634 = vmatpush.bf16.msrb.mxu2 %v978_v63 }
  0x3d   :  { %647 = vmatpush.bf16.msrb.mxu3 %v986_v0 }
  0x3e   :  { %609 = vmatpush.bf16.msrb.mxu0 %v961_v1 }
  0x3f   :  { %622 = vmatpush.bf16.msrb.mxu1 %v969_v2 }
  0x40   :  { %635 = vmatpush.bf16.msrb.mxu2 %v977_v3 }
  0x41   :  { %648 = vmatpush.bf16.msrb.mxu3 %v985_v4  ;;  %610 = vmatmul.bf16.vlgmr.msrb.gmra.mxu0 %v154_v5 }
  0x42   :  { %623 = vmatmul.bf16.vlgmr.msrb.gmra.mxu1 %v155_v6 }
  0x43   :  { %636 = vmatmul.bf16.vlgmr.msrb.gmra.mxu2 %v156_v7 }
  0x44   :  { %649 = vmatmul.bf16.vlgmr.msrb.gmra.mxu3 %v157_v8 }
  0x9e   :  { %v559_v9 = vpop.f32.mrf.mxu0 }
  0x9f   :  { %v572_v10 = vpop.f32.mrf.mxu1  ;;  %v560_v18 = vadd.f32 %v994_v15, %v559_v9 }
  0xa1   :  { %v573_v19 = vadd.f32 %v572_v10, %v560_v18 }
  0xa6   :  { %v585_v11 = vpop.f32.mrf.mxu2  ;;  %v561_v13 = vpop.f32.mrf.mxu0 }
  0xa7   :  { %v598_v12 = vpop.f32.mrf.mxu3  ;;  %v574_v14 = vpop.f32.mrf.mxu1  ;;  %v586_v20 = vadd.f32 %v585_v11, %v573_v19 }
  0xa9   :  { %v599_v21 = vadd.f32 %v598_v12, %v586_v20 }
  0xae   :  { %v587_v16 = vpop.f32.mrf.mxu2 }
  0xaf   :  { %v600_v17 = vpop.f32.mrf.mxu3 }
  0xbe   :  { %v611_v22 = vpop.f32.mrf.mxu0 }
  0xbf   :  { %v624_v23 = vpop.f32.mrf.mxu1  ;;  %v612_v24 = vadd.f32 %v611_v22, %v599_v21 }
  0xc1   :  { %v625_v25 = vadd.f32 %v624_v23, %v612_v24 }
  0xc6   :  { %v637_v26 = vpop.f32.mrf.mxu2  ;;  %v613_v29 = vpop.f32.mrf.mxu0 }
  0xc7   :  { %v650_v27 = vpop.f32.mrf.mxu3  ;;  %v638_v28 = vadd.f32 %v637_v26, %v625_v25  ;;  %v626_v30 = vpop.f32.mrf.mxu1 }
  0xc9   :  { %v651_v31 = vadd.f32 %v650_v27, %v638_v28 }
  0xcb   :  { %v654_v32 = vmax.f32 %v651_v31, 0.0 }
  0xcd   :  { %656 = vst.msk [vmem:[#allocation2] sm:$0x3] %vm655_vm0, %v654_v32 }
  0xce   :  { %v639_v33 = vpop.f32.mrf.mxu2  ;;  %667 = dma.vmem_to_hbm [thread:$0]  %s663_s5, 32, %s665_s2, [#allocation3]  }
  0xcf   :  { %v652_v34 = vpop.f32.mrf.mxu3 }
  0xd0   :  { %1019 = dma.done.wait [#allocation3], 32  }
  0xd1   :  { %1020 = vsyncadd [#allocation3], 4294967264 }
  0xd2   :  { %672 = vsyncpa [#allocation3], 1 }

</bundles_post_ra>
